<compile_context>
chip_gen: v6e
topology: v6e:2x2x1
jax: 0.10.0
libtpu: 0.0.40
codegen_flags: <defaults>
</compile_context>

<pallas_src>
import functools

import jax
import jax.numpy as jnp
from jax import lax
from jax.experimental import pallas as pl
from jax.experimental.pallas import tpu as pltpu

_MIB = 1024 * 1024


# ---------------------------------------------------------------------------
# Capability probes (cached at module level).
# ---------------------------------------------------------------------------

_VMEM_CAP = None


def _vmem_capacity_bytes() -> int:
    """Physical VMEM per TensorCore (v5e/v6e: 128 MiB, v7x: 64 MiB)."""
    global _VMEM_CAP
    if _VMEM_CAP is None:
        try:
            _VMEM_CAP = int(pltpu.get_tpu_info().vmem_capacity_bytes)
        except Exception:
            _VMEM_CAP = 64 * _MIB  # conservative (v7x per-TC)
    return _VMEM_CAP


_BUFFERED1_OK = None


def _single_buffer_supported() -> bool:
    """Whether pipeline_mode=pl.Buffered(1) works on this JAX/Mosaic build."""
    global _BUFFERED1_OK
    if _BUFFERED1_OK is None:
        try:
            def _probe(x_ref, o_ref):
                o_ref[...] = x_ref[...] + 1.0

            y = pl.pallas_call(
                _probe,
                out_shape=jax.ShapeDtypeStruct((16, 128), jnp.float32),
                grid=(2,),
                in_specs=[pl.BlockSpec((8, 128), lambda i: (0, 0),
                                       pipeline_mode=pl.Buffered(1))],
                out_specs=pl.BlockSpec((8, 128), lambda i: (i, 0)),
            )(jnp.zeros((8, 128), jnp.float32))
            _BUFFERED1_OK = bool(jnp.all(jax.block_until_ready(y) == 1.0))
        except Exception:
            _BUFFERED1_OK = False
    return _BUFFERED1_OK


# ---------------------------------------------------------------------------
# Kernels.
# ---------------------------------------------------------------------------

def _multi_order_grid_kernel(a_ref, o_ref, cur_ref, *, tm: int):
    # a_ref:   (Np, Np)  resident graph (block index only changes with graph)
    # o_ref:   (tm, Np)  output tile for (graph, order k, row tile r)
    # cur_ref: (tm, Np)  un-masked running power (A^(k+1))[row tile], carried
    #                    across the innermost "arbitrary" order axis.
    r = pl.program_id(1)
    k = pl.program_id(2)
    row0 = pl.multiple_of(r * tm, tm)

    @pl.when(k == 0)
    def _init():
        cur_ref[...] = a_ref[pl.ds(row0, tm), :].astype(cur_ref.dtype)

    @pl.when(k > 0)
    def _step():
        # (A^k)[rows] = (A^{k-1})[rows] @ A ; f32 accumulation on the MXU,
        # carried in the compute dtype (matches PyTorch's chaining).
        cur_ref[...] = jnp.dot(
            cur_ref[...], a_ref[...], preferred_element_type=jnp.float32
        ).astype(cur_ref.dtype)

    # Emit this order's tile: full-width unmasked store, then overwrite only
    # the (tm, tm) sub-block that can contain diagonal entries
    # (global rows [row0, row0+tm) x the same columns). 128-aligned offsets.
    o_ref[...] = cur_ref[...].astype(o_ref.dtype)
    li = lax.broadcasted_iota(jnp.int32, (tm, tm), 0)
    ci = lax.broadcasted_iota(jnp.int32, (tm, tm), 1)
    diag_blk = cur_ref[:, pl.ds(row0, tm)]
    o_ref[:, pl.ds(row0, tm)] = jnp.where(li == ci, 0, diag_blk).astype(o_ref.dtype)


def _multi_order_fused_kernel(a_ref, o_ref, cur_ref, *, tm: int, order: int):
    # a_ref:   (Np, Np)         resident graph
    # o_ref:   (order, tm, Np)  all orders for this (graph, row tile)
    # cur_ref: (tm, Np)         un-masked running power
    r = pl.program_id(1)
    row0 = pl.multiple_of(r * tm, tm)
    li = lax.broadcasted_iota(jnp.int32, (tm, tm), 0)
    ci = lax.broadcasted_iota(jnp.int32, (tm, tm), 1)
    is_diag = li == ci

    cur_ref[...] = a_ref[pl.ds(row0, tm), :].astype(cur_ref.dtype)

    def emit(k):
        o_ref[k, :, :] = cur_ref[...].astype(o_ref.dtype)
        blk = cur_ref[:, pl.ds(row0, tm)]
        o_ref[k, :, pl.ds(row0, tm)] = jnp.where(is_diag, 0, blk).astype(o_ref.dtype)

    emit(0)
    for k in range(1, order):  # small static order -> fully unrolled
        cur_ref[...] = jnp.dot(
            cur_ref[...], a_ref[...], preferred_element_type=jnp.float32
        ).astype(cur_ref.dtype)
        emit(k)


# ---------------------------------------------------------------------------
# Wrapper.
# ---------------------------------------------------------------------------

def multi_order_pallas(adj: jax.Array, order: int = 2, *,
                       tm: int | None = None,
                       compute_dtype=None,
                       fused: bool | None = None) -> jax.Array:
    """adj: (G, N, N) -> (G, order, N, N) with out[g, k-1] = (A_g^k) * (1 - I)."""
    g, n, n2 = adj.shape
    assert n == n2, "adjacency matrices must be square"
    assert order >= 1 and g >= 1

    out_dtype = adj.dtype
    compute_dtype = (jnp.dtype(compute_dtype) if compute_dtype is not None
                     else jnp.dtype(adj.dtype))

    # Pad N to a lane-dense multiple of 128 (zero padding is exact for matrix
    # powers: the padded block stays zero and is sliced off at the end).
    n_p = max(128, ((n + 127) // 128) * 128)
    adj_c = adj.astype(compute_dtype)
    if n_p != n:
        adj_p = jnp.zeros((g, n_p, n_p), compute_dtype).at[:, :n, :n].set(adj_c)
    else:
        adj_p = adj_c

    csize = compute_dtype.itemsize
    osize = jnp.dtype(out_dtype).itemsize
    cap = _vmem_capacity_bytes()
    hard_cap = max(cap - 2 * _MIB, 16 * _MIB)
    single_buffer_a = _single_buffer_supported()

    # --- Row-tile size ------------------------------------------------------
    if tm is None:
        if cap >= 96 * _MIB and n_p % 512 == 0 and n_p >= 2048:
            tm = 512                      # v5e/v6e: VMEM is plentiful
        elif n_p % 256 == 0:
            tm = 256
        else:
            tm = 128
        # Keep both v7x TensorCores busy for single-graph inputs: make sure the
        # "parallel" row-tile axis has at least 2 blocks when possible.
        if g == 1 and n_p // tm < 2:
            for cand in (256, 128):
                if cand < tm and n_p % cand == 0 and n_p // cand >= 2:
                    tm = cand
                    break
    tm = min(tm, n_p)
    assert n_p % tm == 0, f"tm={tm} must divide padded size {n_p}"

    # --- Fused-order vs order-in-grid ----------------------------------------
    if fused is None:
        fused = n_p <= 1024  # small graphs: per-grid-step overhead dominates

    def vmem_need(tm_, fused_, single_buf_):
        a_bytes = (1 if single_buf_ else 2) * n_p * n_p * csize
        out_blk = (order if fused_ else 1) * tm_ * n_p * osize
        scratch = tm_ * n_p * csize
        temps = 3 * tm_ * tm_ * 4          # iota/compare/select temporaries
        return a_bytes + 2 * out_blk + scratch + temps + 4 * _MIB

    while (vmem_need(tm, fused, single_buffer_a) > hard_cap
           and tm > 128 and n_p % (tm // 2) == 0):
        tm //= 2
    if fused and vmem_need(tm, True, single_buffer_a) > hard_cap:
        fused = False
    # TODO(synk): K-tiled streaming of A for graphs whose single (Np, Np) copy
    # exceeds VMEM (Np >~ 3.5k f32 on v7x); currently we only clamp the limit.
    n_row_tiles = n_p // tm

    cost = pl.CostEstimate(
        flops=int(2 * g * max(order - 1, 0) * n_p * n_p * n_p),
        transcendentals=0,
        bytes_accessed=int(g * n_p * n_p * csize + g * order * n_p * n_p * osize),
    )

    def run(single_buf: bool):
        a_spec_kwargs = {}
        if single_buf:
            # A's block index only changes with the graph axis -> keep a single
            # resident copy instead of the default double buffer.
            a_spec_kwargs["pipeline_mode"] = pl.Buffered(1)

        need = vmem_need(tm, fused, single_buf)
        vmem_limit = int(min(hard_cap, max(32 * _MIB, need)))

        if fused:
            kernel = functools.partial(_multi_order_fused_kernel, tm=tm, order=order)
            grid = (g, n_row_tiles)
            in_specs = [pl.BlockSpec((None, n_p, n_p),
                                     lambda gi, r: (gi, 0, 0), **a_spec_kwargs)]
            out_specs = pl.BlockSpec((None, order, tm, n_p),
                                     lambda gi, r: (gi, 0, r, 0))
            dims = ("parallel", "parallel")
        else:
            kernel = functools.partial(_multi_order_grid_kernel, tm=tm)
            grid = (g, n_row_tiles, order)
            in_specs = [pl.BlockSpec((None, n_p, n_p),
                                     lambda gi, r, k: (gi, 0, 0), **a_spec_kwargs)]
            out_specs = pl.BlockSpec((None, None, tm, n_p),
                                     lambda gi, r, k: (gi, k, r, 0))
            dims = ("parallel", "parallel", "arbitrary")

        return pl.pallas_call(
            kernel,
            out_shape=jax.ShapeDtypeStruct((g, order, n_p, n_p), out_dtype),
            grid_spec=pltpu.PrefetchScalarGridSpec(
                num_scalar_prefetch=0,
                grid=grid,
                in_specs=in_specs,
                out_specs=out_specs,
                scratch_shapes=[pltpu.VMEM((tm, n_p), compute_dtype)],
            ),
            compiler_params=pltpu.CompilerParams(
                dimension_semantics=dims,
                vmem_limit_bytes=vmem_limit,
            ),
            cost_estimate=cost,
        )(adj_p)

    try:
        out = run(single_buffer_a)
    except Exception:
        if not single_buffer_a:
            raise
        out = run(False)  # defensive fallback to default double buffering

    if n_p != n:
        out = out[:, :, :n, :n]
    return out


def _multi_order_xla(adj: jax.Array, order: int = 2) -> jax.Array:
    """Plain-XLA path for tiny graphs (padding N<<128 to 128 lanes wastes
    ~100x the FLOPs / HBM writeback, so don't send these through Pallas)."""
    n = adj.shape[1]
    mask = 1 - jnp.eye(n, dtype=adj.dtype)
    cur = adj
    outs = [cur * mask]
    for _ in range(2, order + 1):
        cur = jnp.matmul(cur, adj)
        outs.append(cur * mask)
    return jnp.stack(outs, axis=1)


def multi_order(adj: jax.Array, order: int = 2, **kwargs) -> jax.Array:
    """Dispatcher: Pallas kernel for lane-sized graphs, XLA for tiny ones."""
    if adj.shape[1] < 64:
        return _multi_order_xla(adj, order=order)
    return multi_order_pallas(adj, order=order, **kwargs)


def multi_order_forward(adj: jax.Array, order: int = 2):
    """Mirror of MultiOrder.forward: list (over graphs) of lists (over orders)
    of (N, N) arrays.  Host-side glue only — keep out of benchmark paths."""
    stacked = multi_order(adj, order=order)  # (G, order, N, N)
    return [[stacked[gi, k] for k in range(order)] for gi in range(adj.shape[0])]


def _reference(adj: jax.Array, order: int = 2) -> jax.Array:
    """Pure-JAX reference reproducing the PyTorch code exactly."""
    g, n, _ = adj.shape
    mask = 1.0 - jnp.eye(n, dtype=adj.dtype)
    outs = []
    for gi in range(g):
        graph = adj[gi]
        cur = graph
        per_graph = [cur * mask]
        for _ in range(2, order + 1):
            cur = jnp.matmul(cur, graph)
            per_graph.append(cur * mask)
        outs.append(jnp.stack(per_graph, axis=0))
    return jnp.stack(outs, axis=0)


if __name__ == "__main__":
    key = jax.random.PRNGKey(0)
    k1, k2, k3, k4 = jax.random.split(key, 4)

    # 1) Fused-order kernel: 2 graphs, N=128, order=2.
    G, N, ORDER = 2, 128, 2
    adj = jax.random.uniform(k1, (G, N, N), dtype=jnp.float32)
    out = jax.block_until_ready(multi_order_pallas(adj, order=ORDER))
    ref = _reference(adj, order=ORDER)
    assert out.shape == (G, ORDER, N, N)
    assert jnp.allclose(out, ref, rtol=1e-4, atol=1e-4), "fused kernel mismatch"

    # 2) Padding path (N=200 -> 256), order=3, fused.
    G2, N2, ORDER2 = 2, 200, 3
    adj2 = jax.random.uniform(k2, (G2, N2, N2), dtype=jnp.float32)
    out2 = jax.block_until_ready(multi_order_pallas(adj2, order=ORDER2))
    ref2 = _reference(adj2, order=ORDER2)
    assert out2.shape == (G2, ORDER2, N2, N2)
    assert jnp.allclose(out2, ref2, rtol=1e-4, atol=1e-3), "padded kernel mismatch"

    # 3) Order-in-grid kernel (carried scratch across the 'arbitrary' axis);
    #    single graph -> rows split into 2 tiles (keeps both v7x TCs busy).
    G3, N3, ORDER3 = 1, 256, 3
    adj3 = jax.random.uniform(k3, (G3, N3, N3), dtype=jnp.float32)
    out3 = jax.block_until_ready(multi_order_pallas(adj3, order=ORDER3, fused=False))
    ref3 = _reference(adj3, order=ORDER3)
    assert out3.shape == (G3, ORDER3, N3, N3)
    assert jnp.allclose(out3, ref3, rtol=1e-4, atol=1e-3), "grid kernel mismatch"

    # 4) Opt-in bf16 MXU fast path for f32 inputs (looser tolerance).
    adj_s = adj / N
    out_bf = jax.block_until_ready(
        multi_order_pallas(adj_s, order=ORDER, compute_dtype=jnp.bfloat16))
    ref_s = _reference(adj_s, order=ORDER)
    assert out_bf.dtype == adj_s.dtype
    assert jnp.allclose(out_bf, ref_s, rtol=2e-2, atol=1e-4), "bf16 path mismatch"

    # 5) Tiny-graph fallback (N << 128: don't pad, use plain XLA matmuls).
    adj_t = jax.random.uniform(k4, (2, 16, 16), dtype=jnp.float32)
    out_t = jax.block_until_ready(multi_order(adj_t, order=2))
    assert jnp.allclose(out_t, _reference(adj_t, order=2), rtol=1e-6, atol=1e-6), \
        "tiny-graph fallback mismatch"

    # 6) List-of-lists API parity with MultiOrder.forward.
    nested = multi_order_forward(adj, order=ORDER)
    assert len(nested) == G and len(nested[0]) == ORDER
    assert nested[0][0].shape == (N, N)

    print("KERNEL_OK")
</pallas_src>

<mosaic_0001>
module attributes {stable_mosaic.version = 11 : i64} {
  func.func @_probe(%arg0: i32, %arg1: memref<8x128xf32, #tpu.memory_space<vmem>>, %arg2: memref<8x128xf32, #tpu.memory_space<vmem>>) attributes {dimension_semantics = [#tpu.dimension_semantics<arbitrary>], iteration_bounds = array<i64: 2>, scalar_prefetch = 0 : i64, scratch_operands = 0 : i64, tpu.core_type = #tpu.core_type<tc>, window_params = [{pipeline_mode = #tpu.pipeline_mode<synchronous>, transform_indices = @transform_0, window_bounds = array<i64: 8, 128>}, {transform_indices = @transform_1, window_bounds = array<i64: 8, 128>}]} {
    %c0 = arith.constant 0 : index
    %c0_0 = arith.constant 0 : index
    %0 = vector.load %arg1[%c0, %c0_0] : memref<8x128xf32, #tpu.memory_space<vmem>>, vector<8x128xf32>
    %cst = arith.constant 1.000000e+00 : f32
    %1 = vector.broadcast %cst : f32 to vector<8x128xf32>
    %2 = arith.addf %0, %1 : vector<8x128xf32>
    %c0_1 = arith.constant 0 : index
    %c0_2 = arith.constant 0 : index
    %3 = vector.load %arg2[%c0_1, %c0_2] : memref<8x128xf32, #tpu.memory_space<vmem>>, vector<8x128xf32>
    tpu.vector_store %arg2[%c0_1, %c0_2], %2 {strides = array<i32>} : memref<8x128xf32, #tpu.memory_space<vmem>>, vector<8x128xf32>,
    return
  }
  func.func @transform_0(%arg0: i32) -> (i32, i32) {
    %c0_i32 = arith.constant 0 : i32
    %c0_i32_0 = arith.constant 0 : i32
    %c0_i32_1 = arith.constant 0 : i32
    return %c0_i32, %c0_i32_0 : i32, i32
  }
  func.func @transform_1(%arg0: i32) -> (i32, i32) {
    %c0_i32 = arith.constant 0 : i32
    %c0_i32_0 = arith.constant 0 : i32
    return %arg0, %c0_i32 : i32, i32
  }
}

module attributes {stable_mosaic.version = 11 : i64} {
  func.func @_multi_order_fused_kernel(%arg0: i32, %arg1: i32, %arg2: memref<1x128x128xf32, #tpu.memory_space<vmem>>, %arg3: memref<1x2x128x128xf32, #tpu.memory_space<vmem>>, %arg4: memref<128x128xf32, #tpu.memory_space<vmem>>) attributes {dimension_semantics = [#tpu.dimension_semantics<parallel>, #tpu.dimension_semantics<parallel>], iteration_bounds = array<i64: 2, 1>, scalar_prefetch = 0 : i64, scratch_operands = 1 : i64, tpu.core_type = #tpu.core_type<tc>, window_params = [{transform_indices = @transform_0, window_bounds = array<i64: 1, 128, 128>}, {transform_indices = @transform_1, window_bounds = array<i64: 1, 2, 128, 128>}]} {
    %c128_i32 = arith.constant 128 : i32
    %0 = arith.muli %arg1, %c128_i32 : i32
    %1 = tpu.assume_multiple %0, 128 : i32
    %2 = tpu.iota {dimensions = array<i32: 0>} : vector<128x128xi32>
    %3 = tpu.iota {dimensions = array<i32: 1>} : vector<128x128xi32>
    %4 = arith.cmpi eq, %2, %3 : vector<128x128xi32>
    %c0 = arith.constant 0 : index
    %5 = arith.index_cast %1 : i32 to index
    %c0_0 = arith.constant 0 : index
    %6 = vector.load %arg2[%c0, %5, %c0_0] : memref<1x128x128xf32, #tpu.memory_space<vmem>>, vector<1x128x128xf32>
    %7 = vector.shape_cast %6 : vector<1x128x128xf32> to vector<128x128xf32>
    %c0_1 = arith.constant 0 : index
    %c0_2 = arith.constant 0 : index
    %8 = vector.load %arg4[%c0_1, %c0_2] : memref<128x128xf32, #tpu.memory_space<vmem>>, vector<128x128xf32>
    tpu.vector_store %arg4[%c0_1, %c0_2], %7 {strides = array<i32>} : memref<128x128xf32, #tpu.memory_space<vmem>>, vector<128x128xf32>,
    %c0_3 = arith.constant 0 : index
    %c0_4 = arith.constant 0 : index
    %9 = vector.load %arg4[%c0_3, %c0_4] : memref<128x128xf32, #tpu.memory_space<vmem>>, vector<128x128xf32>
    %c0_5 = arith.constant 0 : index
    %c0_6 = arith.constant 0 : index
    %c0_7 = arith.constant 0 : index
    %c0_8 = arith.constant 0 : index
    %10 = vector.load %arg3[%c0_5, %c0_6, %c0_7, %c0_8] : memref<1x2x128x128xf32, #tpu.memory_space<vmem>>, vector<1x1x128x128xf32>
    %11 = vector.shape_cast %10 : vector<1x1x128x128xf32> to vector<128x128xf32>
    %12 = vector.shape_cast %9 : vector<128x128xf32> to vector<1x1x128x128xf32>
    tpu.vector_store %arg3[%c0_5, %c0_6, %c0_7, %c0_8], %12 {strides = array<i32>} : memref<1x2x128x128xf32, #tpu.memory_space<vmem>>, vector<1x1x128x128xf32>,
    %c0_9 = arith.constant 0 : index
    %13 = arith.index_cast %1 : i32 to index
    %14 = vector.load %arg4[%c0_9, %13] : memref<128x128xf32, #tpu.memory_space<vmem>>, vector<128x128xf32>
    %c0_i32 = arith.constant 0 : i32
    %15 = arith.sitofp %c0_i32 : i32 to f32
    %16 = vector.broadcast %15 : f32 to vector<128x128xf32>
    %17 = arith.select %4, %16, %14 : vector<128x128xi1>, vector<128x128xf32>
    %c0_10 = arith.constant 0 : index
    %c0_11 = arith.constant 0 : index
    %c0_12 = arith.constant 0 : index
    %18 = arith.index_cast %1 : i32 to index
    %19 = vector.load %arg3[%c0_10, %c0_11, %c0_12, %18] : memref<1x2x128x128xf32, #tpu.memory_space<vmem>>, vector<1x1x128x128xf32>
    %20 = vector.shape_cast %19 : vector<1x1x128x128xf32> to vector<128x128xf32>
    %21 = vector.shape_cast %17 : vector<128x128xf32> to vector<1x1x128x128xf32>
    tpu.vector_store %arg3[%c0_10, %c0_11, %c0_12, %18], %21 {strides = array<i32>} : memref<1x2x128x128xf32, #tpu.memory_space<vmem>>, vector<1x1x128x128xf32>,
    %c0_13 = arith.constant 0 : index
    %c0_14 = arith.constant 0 : index
    %22 = vector.load %arg4[%c0_13, %c0_14] : memref<128x128xf32, #tpu.memory_space<vmem>>, vector<128x128xf32>
    %c0_15 = arith.constant 0 : index
    %c0_16 = arith.constant 0 : index
    %c0_17 = arith.constant 0 : index
    %23 = vector.load %arg2[%c0_15, %c0_16, %c0_17] : memref<1x128x128xf32, #tpu.memory_space<vmem>>, vector<1x128x128xf32>
    %24 = vector.shape_cast %23 : vector<1x128x128xf32> to vector<128x128xf32>
    %cst = arith.constant dense<0.000000e+00> : vector<128x128xf32>
    %25 = tpu.matmul %22, %24, %cst {dimension_numbers = #tpu.dot_dimension_numbers<[1], [0], [0], [1], [0, 0, 1, 1], [], []>} : vector<128x128xf32>, vector<128x128xf32>, vector<128x128xf32> -> vector<128x128xf32>
    %c0_18 = arith.constant 0 : index
    %c0_19 = arith.constant 0 : index
    %26 = vector.load %arg4[%c0_18, %c0_19] : memref<128x128xf32, #tpu.memory_space<vmem>>, vector<128x128xf32>
    tpu.vector_store %arg4[%c0_18, %c0_19], %25 {strides = array<i32>} : memref<128x128xf32, #tpu.memory_space<vmem>>, vector<128x128xf32>,
    %c0_20 = arith.constant 0 : index
    %c0_21 = arith.constant 0 : index
    %27 = vector.load %arg4[%c0_20, %c0_21] : memref<128x128xf32, #tpu.memory_space<vmem>>, vector<128x128xf32>
    %c0_22 = arith.constant 0 : index
    %c1 = arith.constant 1 : index
    %c0_23 = arith.constant 0 : index
    %c0_24 = arith.constant 0 : index
    %28 = vector.load %arg3[%c0_22, %c1, %c0_23, %c0_24] : memref<1x2x128x128xf32, #tpu.memory_space<vmem>>, vector<1x1x128x128xf32>
    %29 = vector.shape_cast %28 : vector<1x1x128x128xf32> to vector<128x128xf32>
    %30 = vector.shape_cast %27 : vector<128x128xf32> to vector<1x1x128x128xf32>
    tpu.vector_store %arg3[%c0_22, %c1, %c0_23, %c0_24], %30 {strides = array<i32>} : memref<1x2x128x128xf32, #tpu.memory_space<vmem>>, vector<1x1x128x128xf32>,
    %c0_25 = arith.constant 0 : index
    %31 = arith.index_cast %1 : i32 to index
    %32 = vector.load %arg4[%c0_25, %31] : memref<128x128xf32, #tpu.memory_space<vmem>>, vector<128x128xf32>
    %c0_i32_26 = arith.constant 0 : i32
    %33 = arith.sitofp %c0_i32_26 : i32 to f32
    %34 = vector.broadcast %33 : f32 to vector<128x128xf32>
    %35 = arith.select %4, %34, %32 : vector<128x128xi1>, vector<128x128xf32>
    %c0_27 = arith.constant 0 : index
    %c1_28 = arith.constant 1 : index
    %c0_29 = arith.constant 0 : index
    %36 = arith.index_cast %1 : i32 to index
    %37 = vector.load %arg3[%c0_27, %c1_28, %c0_29, %36] : memref<1x2x128x128xf32, #tpu.memory_space<vmem>>, vector<1x1x128x128xf32>
    %38 = vector.shape_cast %37 : vector<1x1x128x128xf32> to vector<128x128xf32>
    %39 = vector.shape_cast %35 : vector<128x128xf32> to vector<1x1x128x128xf32>
    tpu.vector_store %arg3[%c0_27, %c1_28, %c0_29, %36], %39 {strides = array<i32>} : memref<1x2x128x128xf32, #tpu.memory_space<vmem>>, vector<1x1x128x128xf32>,
    return
  }
  func.func @transform_0(%arg0: i32, %arg1: i32) -> (i32, i32, i32) {
    %c0_i32 = arith.constant 0 : i32
    %c0_i32_0 = arith.constant 0 : i32
    %c0_i32_1 = arith.constant 0 : i32
    return %arg0, %c0_i32, %c0_i32_0 : i32, i32, i32
  }
  func.func @transform_1(%arg0: i32, %arg1: i32) -> (i32, i32, i32, i32) {
    %c0_i32 = arith.constant 0 : i32
    %c0_i32_0 = arith.constant 0 : i32
    %c0_i32_1 = arith.constant 0 : i32
    return %arg0, %c0_i32, %arg1, %c0_i32_0 : i32, i32, i32, i32
  }
}

</mosaic_0001>

<bundles_post_ra>
// kernel: tpu_custom_call.1
= control target key start
LH: loop header
LB: loop body
LE: loop exit
PB: predicated region body
PF: predicated region fallthrough
CT: control target
= control target key end

     0   :  { %6 = vsyncpa [#allocation3], 0  ;;  %s448_s0 = inlined_call_operand.hbm [shape: f32[8,128], index: 0, kind: input, shape index: {}]   ;;  %s449_s1 = inlined_call_operand.hbm [shape: f32[16,128], index: 1, kind: output, shape index: {}]  }
   0x1   :  { %7 = vsyncpa [#allocation4], 0 }
   0x2   :  { %9 = vsyncpa [#allocation4 + $0x1], 0  ;;  %s348_s6 = smov 0   ;;  %s350_s7 = smov 0  }
   0x3   :  { %s352_s8 = smov 0   ;;  %s354_s9 = smov 0  }
   0x4 LB: > { %s369_s10 = sadd.s32 4294967295, %s334_s9   ;;  %s184_s11 = sadd.s32 4294967294, %s334_s9   ;;  %s334_s9 = sphi %s354_s9, %s457_s9   ;;  %s330_s8 = sphi %s352_s8, %s456_s8   ;;  %s326_s7 = sphi %s350_s7, %s455_s7   ;;  %s322_s6 = sphi %s348_s6, %s454_s6  }
   0x5   : > { %s373_s12 = sadd.s32 1, %s334_s9   ;;  %s43_s13 = sadd.s32 1, %s330_s8 }
   0x6   : > { %s40_s14 = ssub.s32 %s334_s9, %s373_s12  ;;  %p53_p0 = scmp.ne.s32.totalorder %s330_s8, %s326_s7 }
   0x7   : > { %p41_p1 = scmp.eq.s32.totalorder %s40_s14, 0  ;;  %p54_p2 = scmp.eq.s32.totalorder %s369_s10, 1 }
   0x8   : > { %p59_p3 = scmp.ne.s32.totalorder %s326_s7, %s322_s6  ;;  %p60_p4 = scmp.eq.s32.totalorder %s184_s11, 1 }
   0x9   : > { %s384_s15 = scalar_select %p41_p1, %s330_s8, %s43_s13  }
   0xa   : > { %p386_p5 = por %p54_p2, %p53_p0  ;;  %p390_p6 = por %p60_p4, %p59_p3 }
   0xb   : > { %p185_p7 = scmp.ge.s32.totalorder %s334_s9, 1  ;;  %p67_p8 = scmp.lt.s32.totalorder %s334_s9, 3 }
   0xc   : > { %s451_s17 = scalar_select %p390_p6, 1, 0 }
   0xd   : > { %p208_p9 = scmp.eq.s32.totalorder %s369_s10, 0  ;;  %p397_p10 = pnand %p185_p7, %p67_p8 }
   0xe   : > { %s336_s19 = smov [#allocation2]  }
   0xf   : > { %s80_s20 = sshll.u32 %s336_s19, 4  ;;  %p200_p11 = pneg %p397_p10  ;;  %s81_s20 = int_to_ptr.vmem [resolvable:$true] %s80_s20 }
  0x10   : > { %s255_s21 = scalar_lea.vmem %s81_s20, 128  ;;  %p263_p3 = scmp.lt.s32.totalorder %s81_s20, %s81_s20 }
  0x11   : > { %p201_p12 = pnand %p208_p9, %p200_p11  ;;  %p256_p0 = scmp.ne.s32.totalorder %s81_s20, %s255_s21 }
  0x12   : > { %p264_p4 = scmp.lt.s32.totalorder %s255_s21, %s255_s21 }
  0x13   : > { %p246_p13 = pneg %p201_p12 }
  0x14   : > { %p265_p6 = por %p264_p4, %p263_p3 }
  0x15   : > { %p258_p1 = pnand %p256_p0, %p246_p13 }
  0x17   : > { %p259_p2 = pneg %p258_p1 }
  0x19   : > { %p266_p7 = pnand %p265_p6, %p259_p2 }
  0x1b   : > { %269 = shalt.err (!%p266_p7)
}
  0x1c   : > { %203 = dma.hbm_to_vmem [thread:$0]  (!%p201_p12), %s448_s0, 128, %s81_s20, [#allocation3]  }
  0x1d   : > { %93 = sbr.rel (%p397_p10) target bundleno = 60 (0x3c), region = 24 }
  0x22   : > { %313 = dma.done.wait (%p208_p9), [#allocation3], 128  }
  0x23   : > { %315 = vsyncadd (%p208_p9), [#allocation3], 4294967168  ;;  %s105_s24 = sand.u32 1, %s326_s7   ;;  %s191_s28 = sshll.u32 %s369_s10, 7  ;;  %v108_v0 = vld [vmem:[#allocation2] sm:$0xff] }
  0x24   : > { %s189_s25 = sshll.u32 %s105_s24, 3  ;;  %v109_v1 = vadd.f32 1.0, %v108_v0  ;;  %s123_s2 = scalar_lea.hbm %s449_s1, %s191_s28 }
  0x25   : > { %s107_s26 = scalar_lea.vmem [#allocation5], %s189_s25  ;;  %s112_s3 = scalar_lea.sflag [#allocation4], %s105_s24 }
  0x26   : > { %s125_s27 = sshll.u32 %s107_s26, 4  ;;  %110 = vst [vmem:[%s107_s26] sm:$0xff] %v109_v1  ;;  %s337_s5 = smov [#allocation5]   ;;  %s126_s27 = int_to_ptr.vmem [resolvable:$true] %s125_s27 }
  0x27   : > { %s270_s4 = scalar_lea.vmem %s126_s27, 128  ;;  %s274_s11 = sshll.u32 %s337_s5, 4  ;;  %s275_s11 = int_to_ptr.vmem [resolvable:$false] %s274_s11 }
  0x28   : > { %p271_p6 = scmp.ne.s32.totalorder %s126_s27, %s270_s4  ;;  %s276_s13 = scalar_lea.vmem %s275_s11, 256 }
  0x29   : > { %p277_p10 = scmp.lt.s32.totalorder %s126_s27, %s275_s11  ;;  %p278_p11 = scmp.lt.s32.totalorder %s276_s13, %s270_s4 }
  0x2a   : > { %p272_p8 = pnand %p271_p6, %p386_p5 }
  0x2b   : > { %p279_p12 = por %p278_p11, %p277_p10 }
  0x2c   : > { %p273_p9 = pneg %p272_p8 }
  0x2e   : > { %p280_p13 = pnand %p279_p12, %p273_p9 }
  0x30   : > { %283 = shalt.err (!%p280_p13)
}
  0x31   : > { %s284_s10 = scalar_lea.hbm %s123_s2, 128  ;;  %s288_s19 = scalar_lea.hbm %s449_s1, 256 }
  0x32   : > { %p285_p0 = scmp.ne.s32.totalorder %s123_s2, %s284_s10  ;;  %p289_p3 = scmp.lt.s32.totalorder %s123_s2, %s449_s1 }
  0x33   : > { %p290_p4 = scmp.lt.s32.totalorder %s288_s19, %s284_s10 }
  0x34   : > { %p286_p1 = pnand %p285_p0, %p386_p5 }
  0x35   : > { %p291_p7 = por %p290_p4, %p289_p3 }
  0x36   : > { %p287_p2 = pneg %p286_p1 }
  0x38   : > { %p292_p6 = pnand %p291_p7, %p287_p2 }
  0x3a   : > { %295 = shalt.err (!%p292_p6)
}
  0x3b   : > { %198 = dma.vmem_to_hbm [thread:$0]  (%p386_p5), %s126_s27, 128, %s123_s2, %s112_s3  }
  0x3c PF: > { %p210_p8 = scmp.ge.s32.totalorder %s334_s9, 2  ;;  %s137_s22 = sand.u32 1, %s322_s6  }
  0x3d   : > { %p453_p9 = scmp.ne.s32.totalorder %s451_s17, 0  ;;  %s138_s23 = scalar_lea.sflag [#allocation4], %s137_s22 }
  0x3f   : > { %p205_p10 = pnand %p210_p8, %p453_p9 }
  0x41   : > { %p206_p11 = pneg %p205_p10 }
  0x43   : > { %317 = dma.done.wait (%p206_p11), %s138_s23, 128  }
  0x44   : > { %319 = vsyncadd (%p206_p11), %s138_s23, 4294967168  ;;  %p12_p12 = scmp.ge.s32.totalorder %s373_s12, 4   ;;  %s454_s6 = smov %s326_s7 }
  0x45   : > { %s455_s7 = smov %s330_s8  ;;  %s456_s8 = smov %s384_s15 }
  0x46   : > { %s457_s9 = smov %s373_s12  ;;  %14 = sbr.rel (!%p12_p12) target bundleno = 4 (0x4), region = 61 }
  0x4b   :  { %143 = vsyncpa [#allocation3], 1 }
  0x4c   :  { %145 = vsyncpa [#allocation3 + $0x1], 1 }
  0x4d   :  { %146 = vsyncpa [#allocation4], 1 }
  0x4e   :  { %148 = vsyncpa [#allocation4 + $0x1], 1 }

// kernel: tpu_custom_call.1
= control target key start
LH: loop header
LB: loop body
LE: loop exit
PB: predicated region body
PF: predicated region fallthrough
CT: control target
= control target key end

     0   :  { %6 = vsyncpa [#allocation4], 0  ;;  %s1517_s0 = inlined_call_operand.hbm [shape: f32[2,128,128], index: 0, kind: input, shape index: {}]   ;;  %s1518_s1 = inlined_call_operand.hbm [shape: f32[2,2,128,128], index: 1, kind: output, shape index: {}]  }
   0x1   :  { %8 = vsyncpa [#allocation4 + $0x1], 0 }
   0x2   :  { %9 = vsyncpa [#allocation5], 0 }
   0x3   :  { %11 = vsyncpa [#allocation5 + $0x1], 0  ;;  %s1046_s6 = smov 0   ;;  %s1048_s7 = smov 0  }
   0x4   :  { %s1050_s8 = smov 0   ;;  %s1052_s9 = smov 0  }
   0x5   :  { %s1054_s10 = smov 0   ;;  %s1056_s11 = smov 0  }
   0x6 LB: > { %s685_s12 = sadd.s32 4294967295, %s1028_s11   ;;  %s686_s13 = sadd.s32 4294967294, %s1028_s11   ;;  %s1028_s11 = sphi %s1056_s11, %s17_s11   ;;  %s1024_s10 = sphi %s1054_s10, %s1529_s10   ;;  %s1020_s9 = sphi %s1052_s9, %s1528_s9   ;;  %s1016_s8 = sphi %s1050_s8, %s1527_s8   ;;  %s1012_s7 = sphi %s1048_s7, %s1526_s7   ;;  %s1008_s6 = sphi %s1046_s6, %s1525_s6  }
   0x7   : > { %s29_s14 = sadd.s32 1, %s1024_s10  ;;  %s36_s15 = sadd.s32 1, %s1016_s8 }
   0x8   : > { %p31_p0 = scmp.ge.s32.totalorder %s29_s14, 2  ;;  %p43_p1 = scmp.ne.s32.totalorder %s1016_s8, %s1012_s7 }
   0x9   : > { %p44_p2 = scmp.eq.s32.totalorder %s1028_s11, 0  ;;  %p49_p3 = scmp.ne.s32.totalorder %s1012_s7, %s1008_s6 }
   0xa   : > { %s1531_s14 = smov (%p31_p0, %s29_s14), 0  ;;  %p50_p5 = scmp.eq.s32.totalorder %s685_s12, 0 }
   0xb   : > { %p1087_p4 = por %p44_p2, %p43_p1  ;;  %s33_s17 = ssub.s32 %s1024_s10, %s1531_s14 }
   0xc   : > { %p75_p6 = scmp.eq.s32.totalorder %s685_s12, 1  ;;  %p34_p7 = scmp.eq.s32.totalorder %s33_s17, 0 }
   0xd   : > { %p1093_p8 = por %p50_p5, %p49_p3  ;;  %p81_p10 = scmp.eq.s32.totalorder %s686_s13, 1 }
   0xe   : > { %p1097_p9 = por %p75_p6, %p43_p1  ;;  %p866_p13 = scmp.lt.s32.totalorder %s1028_s11, 2 }
   0xf   : > { %s1102_s20 = scalar_select %p34_p7, %s1016_s8, %s36_s15  }
  0x10   : > { %p1104_p11 = por %p81_p10, %p49_p3  ;;  %s101_s22 = sand.u32 1, %s1016_s8  }
  0x11   : > { %s689_s23 = sshll.u32 %s101_s22, 7  ;;  %s732_s24 = sshll.u32 %s1024_s10, 11 }
  0x12   : > { %s111_s27 = scalar_lea.hbm %s1517_s0, %s732_s24  ;;  %s105_s28 = scalar_lea.vmem [#allocation3], %s689_s23 }
  0x13   : > { %s112_s29 = sshll.u32 %s105_s28, 4  ;;  %p1117_p0 = pnand %p866_p13, %p1087_p4  ;;  %s113_s29 = int_to_ptr.vmem [resolvable:$true] %s112_s29 }
  0x14   : > { %p692_p1 = scmp.ge.s32.totalorder %s1028_s11, 1  ;;  %s102_s2 = scalar_lea.sflag [#allocation4], %s101_s22 }
  0x15   : > { %p922_p2 = pneg %p1117_p0  ;;  %s933_s3 = scalar_lea.vmem %s113_s29, 2048 }
  0x16   : > { %p934_p3 = scmp.ne.s32.totalorder %s113_s29, %s933_s3  ;;  %s1030_s4 = smov [#allocation3]  }
  0x17   : > { %s938_s5 = sshll.u32 %s1030_s4, 4  ;;  %s939_s5 = int_to_ptr.vmem [resolvable:$false] %s938_s5 }
  0x18   : > { %p936_p5 = pnand %p934_p3, %p922_p2  ;;  %s940_s12 = scalar_lea.vmem %s939_s5, 4096 }
  0x19   : > { %p941_p7 = scmp.lt.s32.totalorder %s113_s29, %s939_s5  ;;  %p942_p10 = scmp.lt.s32.totalorder %s940_s12, %s933_s3 }
  0x1a   : > { %p937_p6 = pneg %p936_p5 }
  0x1b   : > { %p943_p12 = por %p942_p10, %p941_p7 }
  0x1d   : > { %p944_p4 = pnand %p943_p12, %p937_p6 }
  0x1f   : > { %947 = shalt.err (!%p944_p4)
}
  0x20   : > { %s1031_s13 = smov 128   ;;  %s1032_s15 = smov 8  }
  0x21   : > { %861 = dma.hbm_to_vmem [thread:$0]  (!%p1117_p0), %s111_s27, 2048, %s113_s29, %s102_s2, %s1031_s13, %s1031_s13, %s1032_s15  }
  0x22   : > { %p120_p13 = scmp.lt.s32.totalorder %s1028_s11, 3 }
  0x24   : > { %p121_p2 = pnand %p692_p1, %p120_p13 }
  0x25   : > { %s1130_s16 = sand.u32 (!%p121_p2), 1, %s1012_s7  }
  0x26   : > { %124 = sbr.rel (%p121_p2) target bundleno = 300 (0x12c), region = 24  ;;  %s693_s17 = sshll.u32 (!%p121_p2), %s1130_s16, 7 }
  0x27   : > { %s127_s22 = scalar_lea.sflag (!%p121_p2), [#allocation4], %s1130_s16  ;;  %s1134_s23 = scalar_lea.vmem (!%p121_p2), [#allocation3], %s693_s17 }
  0x2b   : > { %999 = dma.done.wait (%p1093_p8), %s127_s22, 2048  }
  0x2c   : > { %1001 = vsyncadd (%p1093_p8), %s127_s22, 4294965248  ;;  %v151_v0 = vlaneseq  ;;  %v1143_v2 = vld [vmem:[%s1134_s23 + $0x78] sm:$0xff]  ;;  %v1146_v3 = vld [vmem:[%s1134_s23 + $0x70] sm:$0xff]  ;;  %s694_s18 = sshll.u32 %s1130_s16, 8  ;;  %s733_s25 = sshll.u32 %s1020_s9, 12 }
  0x2d   : > { %766 = vmatprep.subr.mxu0 %v1143_v2  ;;  %822 = vmatprep.subr.mxu1 %v1143_v2  ;;  %v1158_v6 = vld [vmem:[%s1134_s23 + $0x68] sm:$0xff]  ;;  %v1166_v7 = vld [vmem:[%s1134_s23 + $0x60] sm:$0xff]  ;;  %v1182_v10 = vld [vmem:[%s1134_s23 + $0x58] sm:$0xff]  ;;  %s1184_s24 = scalar_lea.vmem [#allocation6], %s694_s18  ;;  %s1457_s28 = scalar_lea.hbm %s1518_s1, %s733_s25 }
  0x2e   : > { %v1140_v1 = vshrl.u32 %v151_v0, 7  ;;  %v1151_v5 = vand.u32 127, %v151_v0  ;;  %767 = vmatpush3.msra.mxu0 %v1143_v2  ;;  %838 = vmatpush3.msra.mxu1 %v1143_v2  ;;  %v1169_v8 = vld [vmem:[%s1134_s23 + $0x8] sm:$0xff]  ;;  %v1192_v11 = vld [vmem:[%s1134_s23 + $0x50] sm:$0xff]  ;;  %v1206_v13 = vld [vmem:[%s1134_s23 + $0x40] sm:$0xff]  ;;  %s595_s26 = sshll.u32 %s1184_s24, 4  ;;  %s1459_s26 = int_to_ptr.vmem [resolvable:$true] %s595_s26 }
  0x2f   : > { %768 = vmatprep.subr.mxu0 %v1146_v3  ;;  %823 = vmatprep.subr.mxu1 %v1146_v3  ;;  %v1199_v12 = vld [vmem:[%s1134_s23 + $0x48] sm:$0xff]  ;;  %v1213_v14 = vld [vmem:[%s1134_s23 + $0x38] sm:$0xff]  ;;  %v1220_v15 = vld [vmem:[%s1134_s23 + $0x30] sm:$0xff]  ;;  %s580_s29 = scalar_lea.sflag [#allocation5], %s1130_s16  ;;  %s948_s30 = scalar_lea.vmem %s1459_s26, 4096 }
  0x30   : > { %v1149_v4 = vadd.s32 8, %v1140_v1  ;;  %769 = vmatpush3.msra.mxu0 %v1146_v3  ;;  %839 = vmatpush3.msra.mxu1 %v1146_v3  ;;  %v1227_v16 = vld [vmem:[%s1134_s23 + $0x28] sm:$0xff]  ;;  %v1234_v17 = vld [vmem:[%s1134_s23 + $0x20] sm:$0xff]  ;;  %v322_v18 = vld [vmem:[%s1134_s23 + $0x18] sm:$0xff]  ;;  %v1265_v21 = vadd.s32 72, %v1140_v1  ;;  %v1268_v22 = vadd.s32 64, %v1140_v1  ;;  %vm170_vm2 = vcmp.eq.s32.totalorder %v1140_v1, %v1151_v5  ;;  %p949_p8 = scmp.ne.s32.totalorder %s1459_s26, %s948_s30 }
  0x31   : > { %770 = vmatprep.subr.mxu0 %v1158_v6  ;;  %824 = vmatprep.subr.mxu1 %v1158_v6  ;;  %v321_v19 = vld [vmem:[%s1134_s23 + $0x10] sm:$0xff]  ;;  %v319_v20 = vld [vmem:[%s1134_s23] sm:$0xff]  ;;  %v1279_v24 = vadd.s32 24, %v1140_v1  ;;  %v1288_v26 = vadd.s32 88, %v1140_v1  ;;  %v1298_v28 = vadd.s32 16, %v1140_v1  ;;  %v1301_v29 = vadd.s32 80, %v1140_v1 }
  0x32   : > { %vm171_vm0 = vcmp.eq.s32.totalorder %v1149_v4, %v1151_v5  ;;  %771 = vmatpush3.msra.mxu0 %v1158_v6  ;;  %840 = vmatpush3.msra.mxu1 %v1158_v6  ;;  %vm179_vm1 = vcmp.eq.s32.totalorder %v1265_v21, %v1151_v5  ;;  %v270_v25 = vsel %vm170_vm2, 0.0, %v319_v20  ;;  %vm178_vm3 = vcmp.eq.s32.totalorder %v1268_v22, %v1151_v5  ;;  %p950_p12 = pnand %p949_p8, %p1097_p9  ;;  %s1033_s2 = smov [#allocation6]  }
  0x33   : > { %v271_v9 = vsel %vm171_vm0, 0.0, %v1169_v8  ;;  %772 = vmatprep.subr.mxu0 %v1166_v7  ;;  %825 = vmatprep.subr.mxu1 %v1166_v7  ;;  %v279_v23 = vsel %vm179_vm1, 0.0, %v1199_v12  ;;  %287 = vst [vmem:[%s1184_s24] sm:$0xff] %v270_v25  ;;  %v278_v27 = vsel %vm178_vm3, 0.0, %v1206_v13  ;;  %vm173_vm4 = vcmp.eq.s32.totalorder %v1279_v24, %v1151_v5  ;;  %s952_s3 = sshll.u32 %s1033_s2, 4  ;;  %s953_s3 = int_to_ptr.vmem [resolvable:$false] %s952_s3 }
  0x34   : > { %288 = vst [vmem:[%s1184_s24 + $0x8] sm:$0xff] %v271_v9  ;;  %773 = vmatpush3.msra.mxu0 %v1166_v7  ;;  %841 = vmatpush3.msra.mxu1 %v1166_v7  ;;  %296 = vst [vmem:[%s1184_s24 + $0x48] sm:$0xff] %v279_v23  ;;  %v273_v30 = vsel %vm173_vm4, 0.0, %v322_v18  ;;  %vm181_vm5 = vcmp.eq.s32.totalorder %v1288_v26, %v1151_v5  ;;  %vm172_vm6 = vcmp.eq.s32.totalorder %v1298_v28, %v1151_v5  ;;  %p951_p0 = pneg %p950_p12  ;;  %s954_s4 = scalar_lea.vmem %s953_s3, 8192 }
  0x35   : > { %774 = vmatprep.subr.mxu0 %v1182_v10  ;;  %826 = vmatprep.subr.mxu1 %v1182_v10  ;;  %295 = vst [vmem:[%s1184_s24 + $0x40] sm:$0xff] %v278_v27  ;;  %290 = vst [vmem:[%s1184_s24 + $0x18] sm:$0xff] %v273_v30  ;;  %v281_v31 = vsel %vm181_vm5, 0.0, %v1182_v10  ;;  %v1317_v32 = vadd.s32 40, %v1140_v1  ;;  %v272_v33 = vsel %vm172_vm6, 0.0, %v321_v19  ;;  %vm180_vm7 = vcmp.eq.s32.totalorder %v1301_v29, %v1151_v5  ;;  %p955_p1 = scmp.lt.s32.totalorder %s1459_s26, %s953_s3  ;;  %p956_p3 = scmp.lt.s32.totalorder %s954_s4, %s948_s30 }
  0x36   : > { %775 = vmatpush3.msra.mxu0 %v1182_v10  ;;  %842 = vmatpush3.msra.mxu1 %v1182_v10  ;;  %298 = vst [vmem:[%s1184_s24 + $0x58] sm:$0xff] %v281_v31  ;;  %v165_v34 = vadd.s32 104, %v1140_v1  ;;  %289 = vst [vmem:[%s1184_s24 + $0x10] sm:$0xff] %v272_v33  ;;  %v280_v35 = vsel %vm180_vm7, 0.0, %v1192_v11  ;;  %v1334_v36 = vadd.s32 32, %v1140_v1  ;;  %v1337_v37 = vadd.s32 96, %v1140_v1 }
  0x37   : > { %776 = vmatprep.subr.mxu0 %v1192_v11  ;;  %827 = vmatprep.subr.mxu1 %v1192_v11  ;;  %vm175_vm8 = vcmp.eq.s32.totalorder %v1317_v32, %v1151_v5  ;;  %297 = vst [vmem:[%s1184_s24 + $0x50] sm:$0xff] %v280_v35  ;;  %v1352_v40 = vadd.s32 56, %v1140_v1  ;;  %v167_v42 = vadd.s32 120, %v1140_v1  ;;  %v1370_v44 = vadd.s32 48, %v1140_v1  ;;  %p957_p5 = por %p956_p3, %p955_p1 }
  0x38   : > { %777 = vmatpush3.msra.mxu0 %v1192_v11  ;;  %843 = vmatpush3.msra.mxu1 %v1192_v11  ;;  %v275_v38 = vsel %vm175_vm8, 0.0, %v1227_v16  ;;  %vm183_vm9 = vcmp.eq.s32.totalorder %v165_v34, %v1151_v5  ;;  %vm174_vm10 = vcmp.eq.s32.totalorder %v1334_v36, %v1151_v5  ;;  %vm182_vm11 = vcmp.eq.s32.totalorder %v1337_v37, %v1151_v5 }
  0x39   : > { %778 = vmatprep.subr.mxu0 %v1199_v12  ;;  %828 = vmatprep.subr.mxu1 %v1199_v12  ;;  %292 = vst [vmem:[%s1184_s24 + $0x28] sm:$0xff] %v275_v38  ;;  %v283_v39 = vsel %vm183_vm9, 0.0, %v1158_v6  ;;  %v274_v41 = vsel %vm174_vm10, 0.0, %v1234_v17  ;;  %v282_v43 = vsel %vm182_vm11, 0.0, %v1166_v7  ;;  %vm177_vm12 = vcmp.eq.s32.totalorder %v1352_v40, %v1151_v5  ;;  %p958_p6 = pnand %p957_p5, %p951_p0 }
  0x3a   : > { %779 = vmatpush3.msra.mxu0 %v1199_v12  ;;  %844 = vmatpush3.msra.mxu1 %v1199_v12  ;;  %300 = vst [vmem:[%s1184_s24 + $0x68] sm:$0xff] %v283_v39  ;;  %291 = vst [vmem:[%s1184_s24 + $0x20] sm:$0xff] %v274_v41  ;;  %v1373_v45 = vadd.s32 112, %v1140_v1  ;;  %v277_v46 = vsel %vm177_vm12, 0.0, %v1213_v14  ;;  %vm185_vm13 = vcmp.eq.s32.totalorder %v167_v42, %v1151_v5 }
  0x3b   : > { %780 = vmatprep.subr.mxu0 %v1206_v13  ;;  %829 = vmatprep.subr.mxu1 %v1206_v13  ;;  %299 = vst [vmem:[%s1184_s24 + $0x60] sm:$0xff] %v282_v43  ;;  %294 = vst [vmem:[%s1184_s24 + $0x38] sm:$0xff] %v277_v46  ;;  %v285_v47 = vsel %vm185_vm13, 0.0, %v1143_v2  ;;  %vm176_vm14 = vcmp.eq.s32.totalorder %v1370_v44, %v1151_v5 }
  0x3c   : > { %781 = vmatpush3.msra.mxu0 %v1206_v13  ;;  %845 = vmatpush3.msra.mxu1 %v1206_v13  ;;  %vm184_vm15 = vcmp.eq.s32.totalorder %v1373_v45, %v1151_v5  ;;  %302 = vst [vmem:[%s1184_s24 + $0x78] sm:$0xff] %v285_v47  ;;  %v276_v48 = vsel %vm176_vm14, 0.0, %v1220_v15 }
  0x3d   : > { %782 = vmatprep.subr.mxu0 %v1213_v14  ;;  %830 = vmatprep.subr.mxu1 %v1213_v14  ;;  %v284_v49 = vsel %vm184_vm15, 0.0, %v1146_v3  ;;  %293 = vst [vmem:[%s1184_s24 + $0x30] sm:$0xff] %v276_v48 }
  0x3e   : > { %783 = vmatpush3.msra.mxu0 %v1213_v14  ;;  %846 = vmatpush3.msra.mxu1 %v1213_v14  ;;  %301 = vst [vmem:[%s1184_s24 + $0x70] sm:$0xff] %v284_v49 }
  0x3f   : > { %784 = vmatprep.subr.mxu0 %v1220_v15  ;;  %831 = vmatprep.subr.mxu1 %v1220_v15 }
  0x40   : > { %785 = vmatpush3.msra.mxu0 %v1220_v15  ;;  %847 = vmatpush3.msra.mxu1 %v1220_v15 }
  0x41   : > { %786 = vmatprep.subr.mxu0 %v1227_v16  ;;  %832 = vmatprep.subr.mxu1 %v1227_v16 }
  0x42   : > { %787 = vmatpush3.msra.mxu0 %v1227_v16  ;;  %848 = vmatpush3.msra.mxu1 %v1227_v16 }
  0x43   : > { %788 = vmatprep.subr.mxu0 %v1234_v17  ;;  %833 = vmatprep.subr.mxu1 %v1234_v17 }
  0x44   : > { %789 = vmatpush3.msra.mxu0 %v1234_v17  ;;  %849 = vmatpush3.msra.mxu1 %v1234_v17 }
  0x45   : > { %790 = vmatprep.subr.mxu0 %v322_v18  ;;  %834 = vmatprep.subr.mxu1 %v322_v18 }
  0x46   : > { %791 = vmatpush3.msra.mxu0 %v322_v18  ;;  %850 = vmatpush3.msra.mxu1 %v322_v18 }
  0x47   : > { %792 = vmatprep.subr.mxu0 %v321_v19  ;;  %835 = vmatprep.subr.mxu1 %v321_v19 }
  0x48   : > { %793 = vmatpush3.msra.mxu0 %v321_v19  ;;  %851 = vmatpush3.msra.mxu1 %v321_v19 }
  0x49   : > { %794 = vmatprep.subr.mxu0 %v1169_v8  ;;  %836 = vmatprep.subr.mxu1 %v1169_v8 }
  0x4a   : > { %795 = vmatpush3.msra.mxu0 %v1169_v8  ;;  %852 = vmatpush3.msra.mxu1 %v1169_v8 }
  0x4b   : > { %796 = vmatprep.subr.mxu0 %v319_v20  ;;  %837 = vmatprep.subr.mxu1 %v319_v20 }
  0x4c   : > { %797 = vmatpush3.msra.mxu0 %v319_v20  ;;  %853 = vmatpush3.msra.mxu1 %v319_v20 }
  0x4d   : > { %798 = vmatprep.mubr.f32.mxu0 %v319_v20  ;;  %810 = vmatprep.mubr.f32.mxu1 %v1206_v13 }
  0x4e   : > { %799 = vmatmul.mubr.f32.vlgmr.msra.gmra.mxu0 %v1169_v8  ;;  %811 = vmatmul.mubr.f32.vlgmr.msra.gmra.mxu1 %v1199_v12 }
  0x4f   : > { %801 = vmatprep.mubr.f32.mxu0 %v321_v19  ;;  %813 = vmatprep.mubr.f32.mxu1 %v1192_v11 }
  0x52   : > { %802 = vmatmul.mubr.f32.gmra.mxu0 %v322_v18  ;;  %814 = vmatmul.mubr.f32.gmra.mxu1 %v1182_v10 }
  0x53   : > { %804 = vmatprep.mubr.f32.mxu0 %v1234_v17  ;;  %816 = vmatprep.mubr.f32.mxu1 %v1166_v7 }
  0x56   : > { %805 = vmatmul.mubr.f32.gmra.mxu0 %v1227_v16  ;;  %817 = vmatmul.mubr.f32.gmra.mxu1 %v1158_v6 }
  0x57   : > { %807 = vmatprep.mubr.f32.mxu0 %v1220_v15  ;;  %819 = vmatprep.mubr.f32.mxu1 %v1146_v3 }
  0x5a   : > { %808 = vmatmul.mubr.f32.gmra.mxu0 %v1213_v14  ;;  %820 = vmatmul.mubr.f32.gmra.mxu1 %v1143_v2 }
 0x10e   : > { %v800_v50 = vpop.f32.mrf.mxu0  ;;  %v812_v51 = vpop.f32.mrf.mxu1 }
 0x10f   : > { %v546_v52 = vsel %vm171_vm0, 0.0, %v800_v50  ;;  %v554_v53 = vsel %vm179_vm1, 0.0, %v812_v51 }
 0x110   : > { %712 = vst [vmem:[%s1184_s24 + $0x88] sm:$0xff] %v546_v52  ;;  %720 = vst [vmem:[%s1184_s24 + $0xc8] sm:$0xff] %v554_v53  ;;  %v401_v54 = vpop.f32.mrf.mxu0  ;;  %v441_v55 = vpop.f32.mrf.mxu1 }
 0x111   : > { %v545_v56 = vsel %vm170_vm2, 0.0, %v401_v54  ;;  %v553_v57 = vsel %vm178_vm3, 0.0, %v441_v55 }
 0x112   : > { %711 = vst [vmem:[%s1184_s24 + $0x80] sm:$0xff] %v545_v56  ;;  %719 = vst [vmem:[%s1184_s24 + $0xc0] sm:$0xff] %v553_v57  ;;  %v803_v58 = vpop.f32.mrf.mxu0  ;;  %v815_v59 = vpop.f32.mrf.mxu1 }
 0x113   : > { %v548_v60 = vsel %vm173_vm4, 0.0, %v803_v58  ;;  %v556_v61 = vsel %vm181_vm5, 0.0, %v815_v59 }
 0x114   : > { %714 = vst [vmem:[%s1184_s24 + $0x98] sm:$0xff] %v548_v60  ;;  %722 = vst [vmem:[%s1184_s24 + $0xd8] sm:$0xff] %v556_v61  ;;  %v411_v62 = vpop.f32.mrf.mxu0  ;;  %v451_v63 = vpop.f32.mrf.mxu1 }
 0x115   : > { %v547_v0 = vsel %vm172_vm6, 0.0, %v411_v62  ;;  %v555_v1 = vsel %vm180_vm7, 0.0, %v451_v63 }
 0x116   : > { %713 = vst [vmem:[%s1184_s24 + $0x90] sm:$0xff] %v547_v0  ;;  %721 = vst [vmem:[%s1184_s24 + $0xd0] sm:$0xff] %v555_v1  ;;  %v806_v2 = vpop.f32.mrf.mxu0  ;;  %v818_v3 = vpop.f32.mrf.mxu1 }
 0x117   : > { %v550_v4 = vsel %vm175_vm8, 0.0, %v806_v2  ;;  %v558_v6 = vsel %vm183_vm9, 0.0, %v818_v3 }
 0x118   : > { %716 = vst [vmem:[%s1184_s24 + $0xa8] sm:$0xff] %v550_v4  ;;  %724 = vst [vmem:[%s1184_s24 + $0xe8] sm:$0xff] %v558_v6  ;;  %v421_v7 = vpop.f32.mrf.mxu0  ;;  %v461_v8 = vpop.f32.mrf.mxu1 }
 0x119   : > { %v549_v9 = vsel %vm174_vm10, 0.0, %v421_v7  ;;  %v557_v10 = vsel %vm182_vm11, 0.0, %v461_v8 }
 0x11a   : > { %715 = vst [vmem:[%s1184_s24 + $0xa0] sm:$0xff] %v549_v9  ;;  %723 = vst [vmem:[%s1184_s24 + $0xe0] sm:$0xff] %v557_v10  ;;  %v809_v11 = vpop.f32.mrf.mxu0  ;;  %v821_v12 = vpop.f32.mrf.mxu1 }
 0x11b   : > { %v552_v13 = vsel %vm177_vm12, 0.0, %v809_v11  ;;  %v560_v14 = vsel %vm185_vm13, 0.0, %v821_v12 }
 0x11c   : > { %718 = vst [vmem:[%s1184_s24 + $0xb8] sm:$0xff] %v552_v13  ;;  %726 = vst [vmem:[%s1184_s24 + $0xf8] sm:$0xff] %v560_v14  ;;  %v431_v15 = vpop.f32.mrf.mxu0  ;;  %v471_v16 = vpop.f32.mrf.mxu1 }
 0x11d   : > { %v551_v17 = vsel %vm176_vm14, 0.0, %v431_v15  ;;  %v559_v18 = vsel %vm184_vm15, 0.0, %v471_v16 }
 0x11e   : > { %717 = vst [vmem:[%s1184_s24 + $0xb0] sm:$0xff] %v551_v17  ;;  %725 = vst [vmem:[%s1184_s24 + $0xf0] sm:$0xff] %v559_v18 }
 0x11f   : > { %961 = shalt.err (!%p958_p6)
}
 0x120   : > { %s962_s5 = scalar_lea.hbm %s1457_s28, 4096  ;;  %s966_s15 = scalar_lea.hbm %s1518_s1, 8192 }
 0x121   : > { %p963_p7 = scmp.ne.s32.totalorder %s1457_s28, %s962_s5  ;;  %p967_p13 = scmp.lt.s32.totalorder %s1457_s28, %s1518_s1 }
 0x122   : > { %p968_p2 = scmp.lt.s32.totalorder %s966_s15, %s962_s5 }
 0x123   : > { %p964_p10 = pnand %p963_p7, %p1097_p9 }
 0x124   : > { %p969_p8 = por %p968_p2, %p967_p13 }
 0x125   : > { %p965_p4 = pneg %p964_p10 }
 0x127   : > { %p970_p12 = pnand %p969_p8, %p965_p4 }
 0x129   : > { %973 = shalt.err (!%p970_p12)
}
 0x12a   : > { %s1034_s23 = smov 128   ;;  %s1035_s18 = smov 8  }
 0x12b   : > { %856 = dma.vmem_to_hbm [thread:$0]  (%p1097_p9), %s1459_s26, 4096, %s1457_s28, %s580_s29, %s1034_s23, %s1034_s23, %s1035_s18  }
 0x12c PF: > { %s610_s24 = sand.u32 1, %s1008_s6   ;;  %p1524_p0 = scmp.ge.s32.totalorder %s1028_s11, 2 }
 0x12d   : > { %s611_s25 = scalar_lea.sflag [#allocation5], %s610_s24 }
 0x12e   : > { %p863_p1 = pnand %p1524_p0, %p1104_p11 }
 0x130   : > { %p864_p3 = pneg %p863_p1 }
 0x132   : > { %1003 = dma.done.wait (%p864_p3), %s611_s25, 4096  }
 0x133   : > { %1005 = vsyncadd (%p864_p3), %s611_s25, 4294963200  ;;  %s17_s11 = sadd.s32 1, %s1028_s11   ;;  %s1525_s6 = smov %s1012_s7 }
 0x134   : > { %p14_p5 = scmp.ge.s32.totalorder %s17_s11, 4   ;;  %s1526_s7 = smov %s1016_s8 }
 0x135   : > { %s1527_s8 = smov %s1102_s20  ;;  %s1528_s9 = smov %s1024_s10 }
 0x136   : > { %s1529_s10 = smov %s1531_s14  ;;  %16 = sbr.rel (!%p14_p5) target bundleno = 6 (0x6), region = 74 }
 0x13b   :  { %616 = vsyncpa [#allocation4], 1 }
 0x13c   :  { %618 = vsyncpa [#allocation4 + $0x1], 1 }
 0x13d   :  { %619 = vsyncpa [#allocation5], 1 }
 0x13e   :  { %621 = vsyncpa [#allocation5 + $0x1], 1 }

</bundles_post_ra>
